<compile_context>
chip_gen: v7x
topology: tpu7x:2x2x1
jax: 0.10.0
libtpu: 0.0.40
codegen_flags: <defaults>
</compile_context>

<pallas_src>
import functools

import jax
import jax.numpy as jnp
from jax.experimental import pallas as pl
from jax.experimental.pallas import tpu as pltpu


def _dice_partial_kernel(score_ref, target_ref, i_ref, z_ref, y_ref,
                         acc_i, acc_z, acc_y, *, apply_softmax: bool):
    """Accumulates per-class intersect / z_sum / y_sum for one batch element.

    score_ref : (C, TILE) predictions (native dtype, cast to f32 here)
    target_ref: (1, TILE) int8/int32 class-id labels
    i/z/y_ref : (C, 1) f32 per-batch partial sums (written at last tile)
    acc_*     : (C, TILE) f32 VMEM accumulators (elementwise, VALU-only)
    """
    t = pl.program_id(1)

    @pl.when(t == 0)
    def _init():
        acc_i[...] = jnp.zeros_like(acc_i)
        acc_z[...] = jnp.zeros_like(acc_z)
        acc_y[...] = jnp.zeros_like(acc_y)

    score = score_ref[...].astype(jnp.float32)                # (C, T)
    C, T = score.shape

    if apply_softmax:
        # softmax over the class (sublane) axis, matching torch.softmax(dim=1)
        m = jnp.max(score, axis=0, keepdims=True)             # (1, T)
        e = jnp.exp(score - m)                                 # (C, T)
        denom = jnp.sum(e, axis=0, keepdims=True)              # (1, T)
        score = e * pl.reciprocal(denom, approx=False)

    # class match without materializing an f32 one-hot tensor
    tgt = target_ref[...].astype(jnp.int32)                    # (1, T)
    cls_ids = jax.lax.broadcasted_iota(jnp.int32, (C, T), 0)   # (C, T)
    mask = jnp.broadcast_to(tgt, (C, T)) == cls_ids            # bool (C, T)

    acc_i[...] += jnp.where(mask, score, 0.0)
    acc_z[...] += score * score
    acc_y[...] += mask.astype(jnp.float32)                     # mask^2 == mask

    @pl.when(t == pl.num_programs(1) - 1)
    def _finalize():
        i_ref[...] = jnp.sum(acc_i[...], axis=1, keepdims=True)
        z_ref[...] = jnp.sum(acc_z[...], axis=1, keepdims=True)
        y_ref[...] = jnp.sum(acc_y[...], axis=1, keepdims=True)


def _pick_tile(hw, n_classes, score_itemsize, vmem_budget_bytes=16 << 20):
    """Largest lane-tile (multiple of 128 dividing hw) fitting the VMEM budget."""
    # Rough per-lane bytes: 2x double-buffered score tile + 3 f32 accumulators
    # + ~3 live f32 (C, TILE) temporaries + 2x buffered int8 labels.
    per_lane = n_classes * (2 * score_itemsize + 6 * 4) + 2
    cap = max(128, (vmem_budget_bytes // per_lane) // 128 * 128)
    if hw <= cap:
        return hw
    t = cap
    while t >= 128:
        if hw % t == 0:
            return t
        t -= 128
    # TODO(synk): pad ragged HW instead of falling back to a single full block.
    return hw


def dice_loss(inputs, target, weight=None, softmax=False, *, n_classes):
    """JAX/Pallas equivalent of DiceLoss.forward.

    inputs : (N, C, H, W) float predictions (logits if softmax=True)
    target : (N, H, W)    int   class-id labels in [0, n_classes)
    weight : optional length-C list/array of per-class loss weights
    """
    N, C, H, W = inputs.shape
    assert C == n_classes
    HW = H * W

    # Layout plumbing only: free reshapes, no transpose, no upcast.
    score = inputs.reshape(N, C, HW)
    label_dtype = jnp.int8 if n_classes <= 127 else jnp.int32
    labels = target.reshape(N, 1, HW).astype(label_dtype)

    tile = _pick_tile(HW, C, jnp.dtype(score.dtype).itemsize)
    n_t = HW // tile

    kernel = functools.partial(_dice_partial_kernel, apply_softmax=softmax)

    part_shape = jax.ShapeDtypeStruct((N, C, 1), jnp.float32)
    intersect, z_sum, y_sum = pl.pallas_call(
        kernel,
        out_shape=(part_shape, part_shape, part_shape),
        grid_spec=pltpu.PrefetchScalarGridSpec(
            num_scalar_prefetch=0,
            grid=(N, n_t),
            in_specs=[
                pl.BlockSpec((None, C, tile), lambda n, t: (n, 0, t)),
                pl.BlockSpec((None, 1, tile), lambda n, t: (n, 0, t)),
            ],
            out_specs=(
                pl.BlockSpec((None, C, 1), lambda n, t: (n, 0, 0)),
                pl.BlockSpec((None, C, 1), lambda n, t: (n, 0, 0)),
                pl.BlockSpec((None, C, 1), lambda n, t: (n, 0, 0)),
            ),
            scratch_shapes=[pltpu.VMEM((C, tile), jnp.float32)] * 3,
        ),
        compiler_params=pltpu.CompilerParams(
            dimension_semantics=("parallel", "arbitrary"),
            vmem_limit_bytes=32 * 1024 * 1024,
        ),
    )(score, labels)

    # Tiny finalize in plain JAX: combine per-batch partials, per-class dice,
    # weighted mean (a few dozen floats).
    intersect = jnp.sum(intersect[..., 0], axis=0)   # (C,)
    z_sum = jnp.sum(z_sum[..., 0], axis=0)           # (C,)
    y_sum = jnp.sum(y_sum[..., 0], axis=0)           # (C,)

    if weight is None:
        weight = [1.0] * n_classes
    w = jnp.asarray(weight, dtype=jnp.float32)

    smooth = jnp.float32(1e-5)
    dice = 1.0 - (2.0 * intersect + smooth) / (z_sum + y_sum + smooth)  # (C,)
    return jnp.sum(dice * w) / jnp.float32(n_classes)


def _dice_loss_ref(inputs, target, weight=None, softmax=False, *, n_classes):
    """Pure-JAX reference mirroring the PyTorch module, for validation."""
    if softmax:
        inputs = jax.nn.softmax(inputs, axis=1)
    one_hot = jnp.stack([(target == i).astype(jnp.float32)
                         for i in range(n_classes)], axis=1)  # (N, C, H, W)
    if weight is None:
        weight = [1.0] * n_classes
    smooth = 1e-5
    loss = 0.0
    for i in range(n_classes):
        s = inputs[:, i].astype(jnp.float32)
        t = one_hot[:, i]
        intersect = jnp.sum(s * t)
        y_sum = jnp.sum(t * t)
        z_sum = jnp.sum(s * s)
        dice = 1.0 - (2.0 * intersect + smooth) / (z_sum + y_sum + smooth)
        loss = loss + dice * weight[i]
    return loss / n_classes


if __name__ == "__main__":
    N, C, H, W = 2, 4, 16, 16
    key = jax.random.PRNGKey(0)
    k1, k2 = jax.random.split(key)

    inputs = jax.random.normal(k1, (N, C, H, W), dtype=jnp.float32)
    target = jax.random.randint(k2, (N, H, W), 0, C, dtype=jnp.int32)

    # softmax path, uniform weights
    loss = dice_loss(inputs, target, weight=None, softmax=True, n_classes=C)
    loss = jax.block_until_ready(loss)
    ref = _dice_loss_ref(inputs, target, weight=None, softmax=True, n_classes=C)
    assert jnp.allclose(loss, ref, atol=1e-5, rtol=1e-5), (loss, ref)

    # no-softmax path, non-uniform weights
    wts = [0.5, 1.0, 1.5, 2.0]
    loss_w = dice_loss(inputs, target, weight=wts, softmax=False, n_classes=C)
    loss_w = jax.block_until_ready(loss_w)
    ref_w = _dice_loss_ref(inputs, target, weight=wts, softmax=False, n_classes=C)
    assert jnp.allclose(loss_w, ref_w, atol=1e-5, rtol=1e-5), (loss_w, ref_w)

    print("KERNEL_OK")
</pallas_src>

<mosaic_0001>
module attributes {stable_mosaic.version = 11 : i64} {
  func.func @_dice_partial_kernel(%arg0: i32, %arg1: i32, %arg2: memref<1x4x256xf32, #tpu.memory_space<vmem>>, %arg3: memref<1x1x256xi8, #tpu.memory_space<vmem>>, %arg4: memref<1x4x1xf32, #tpu.memory_space<vmem>>, %arg5: memref<1x4x1xf32, #tpu.memory_space<vmem>>, %arg6: memref<1x4x1xf32, #tpu.memory_space<vmem>>, %arg7: memref<4x256xf32, #tpu.memory_space<vmem>>, %arg8: memref<4x256xf32, #tpu.memory_space<vmem>>, %arg9: memref<4x256xf32, #tpu.memory_space<vmem>>) attributes {dimension_semantics = [#tpu.dimension_semantics<parallel>, #tpu.dimension_semantics<arbitrary>], iteration_bounds = array<i64: 2, 1>, scalar_prefetch = 0 : i64, scratch_operands = 3 : i64, tpu.core_type = #tpu.core_type<tc>, window_params = [{transform_indices = @transform_0, window_bounds = array<i64: 1, 4, 256>}, {transform_indices = @transform_1, window_bounds = array<i64: 1, 1, 256>}, {transform_indices = @transform_2, window_bounds = array<i64: 1, 4, 1>}, {transform_indices = @transform_3, window_bounds = array<i64: 1, 4, 1>}, {transform_indices = @transform_4, window_bounds = array<i64: 1, 4, 1>}]} {
    %c0_i32 = arith.constant 0 : i32
    %0 = arith.cmpi eq, %arg1, %c0_i32 : i32
    %1 = arith.extui %0 : i1 to i32
    %c0_i32_0 = arith.constant 0 : i32
    %2 = arith.cmpi ne, %1, %c0_i32_0 : i32
    scf.if %2 {
      %cst_22 = arith.constant 0.000000e+00 : f32
      %39 = vector.broadcast %cst_22 : f32 to vector<4x256xf32>
      %c0_23 = arith.constant 0 : index
      %c0_24 = arith.constant 0 : index
      %40 = vector.load %arg7[%c0_23, %c0_24] : memref<4x256xf32, #tpu.memory_space<vmem>>, vector<4x256xf32>
      tpu.vector_store %arg7[%c0_23, %c0_24], %39 {strides = array<i32>} : memref<4x256xf32, #tpu.memory_space<vmem>>, vector<4x256xf32>,
      %cst_25 = arith.constant 0.000000e+00 : f32
      %41 = vector.broadcast %cst_25 : f32 to vector<4x256xf32>
      %c0_26 = arith.constant 0 : index
      %c0_27 = arith.constant 0 : index
      %42 = vector.load %arg8[%c0_26, %c0_27] : memref<4x256xf32, #tpu.memory_space<vmem>>, vector<4x256xf32>
      tpu.vector_store %arg8[%c0_26, %c0_27], %41 {strides = array<i32>} : memref<4x256xf32, #tpu.memory_space<vmem>>, vector<4x256xf32>,
      %cst_28 = arith.constant 0.000000e+00 : f32
      %43 = vector.broadcast %cst_28 : f32 to vector<4x256xf32>
      %c0_29 = arith.constant 0 : index
      %c0_30 = arith.constant 0 : index
      %44 = vector.load %arg9[%c0_29, %c0_30] : memref<4x256xf32, #tpu.memory_space<vmem>>, vector<4x256xf32>
      tpu.vector_store %arg9[%c0_29, %c0_30], %43 {strides = array<i32>} : memref<4x256xf32, #tpu.memory_space<vmem>>, vector<4x256xf32>,
    } else {
    }
    %c0 = arith.constant 0 : index
    %c0_1 = arith.constant 0 : index
    %c0_2 = arith.constant 0 : index
    %3 = vector.load %arg2[%c0, %c0_1, %c0_2] : memref<1x4x256xf32, #tpu.memory_space<vmem>>, vector<1x4x256xf32>
    %4 = vector.shape_cast %3 : vector<1x4x256xf32> to vector<4x256xf32>
    %cst = arith.constant dense<0xFF800000> : vector<256xf32>
    %5 = vector.multi_reduction <maximumf>, %4, %cst [0] : vector<4x256xf32> to vector<256xf32>
    %6 = vector.shape_cast %5 : vector<256xf32> to vector<1x256xf32>
    %7 = vector.broadcast %6 : vector<1x256xf32> to vector<4x256xf32>
    %8 = arith.subf %4, %7 : vector<4x256xf32>
    %9 = math.exp %8 : vector<4x256xf32>
    %cst_3 = arith.constant dense<0.000000e+00> : vector<256xf32>
    %10 = vector.multi_reduction <add>, %9, %cst_3 [0] : vector<4x256xf32> to vector<256xf32>
    %11 = vector.shape_cast %10 : vector<256xf32> to vector<1x256xf32>
    %12 = tpu.reciprocal %11 : vector<1x256xf32> -> vector<1x256xf32>
    %13 = vector.broadcast %12 : vector<1x256xf32> to vector<4x256xf32>
    %14 = arith.mulf %9, %13 : vector<4x256xf32>
    %c0_4 = arith.constant 0 : index
    %c0_5 = arith.constant 0 : index
    %c0_6 = arith.constant 0 : index
    %15 = vector.load %arg3[%c0_4, %c0_5, %c0_6] : memref<1x1x256xi8, #tpu.memory_space<vmem>>, vector<1x1x256xi8>
    %16 = vector.shape_cast %15 : vector<1x1x256xi8> to vector<1x256xi8>
    %17 = arith.extsi %16 : vector<1x256xi8> to vector<1x256xi32>
    %18 = tpu.iota {dimensions = array<i32: 0>} : vector<4x256xi32>
    %19 = vector.shape_cast %17 : vector<1x256xi32> to vector<1x256xi32>
    %20 = vector.broadcast %19 : vector<1x256xi32> to vector<4x256xi32>
    %21 = arith.cmpi eq, %20, %18 : vector<4x256xi32>
    %c0_7 = arith.constant 0 : index
    %c0_8 = arith.constant 0 : index
    %22 = vector.load %arg7[%c0_7, %c0_8] : memref<4x256xf32, #tpu.memory_space<vmem>>, vector<4x256xf32>
    %cst_9 = arith.constant 0.000000e+00 : f32
    %23 = vector.broadcast %cst_9 : f32 to vector<4x256xf32>
    %24 = arith.select %21, %14, %23 : vector<4x256xi1>, vector<4x256xf32>
    %25 = arith.addf %22, %24 : vector<4x256xf32>
    %c0_10 = arith.constant 0 : index
    %c0_11 = arith.constant 0 : index
    %26 = vector.load %arg7[%c0_10, %c0_11] : memref<4x256xf32, #tpu.memory_space<vmem>>, vector<4x256xf32>
    tpu.vector_store %arg7[%c0_10, %c0_11], %25 {strides = array<i32>} : memref<4x256xf32, #tpu.memory_space<vmem>>, vector<4x256xf32>,
    %c0_12 = arith.constant 0 : index
    %c0_13 = arith.constant 0 : index
    %27 = vector.load %arg8[%c0_12, %c0_13] : memref<4x256xf32, #tpu.memory_space<vmem>>, vector<4x256xf32>
    %28 = arith.mulf %14, %14 : vector<4x256xf32>
    %29 = arith.addf %27, %28 : vector<4x256xf32>
    %c0_14 = arith.constant 0 : index
    %c0_15 = arith.constant 0 : index
    %30 = vector.load %arg8[%c0_14, %c0_15] : memref<4x256xf32, #tpu.memory_space<vmem>>, vector<4x256xf32>
    tpu.vector_store %arg8[%c0_14, %c0_15], %29 {strides = array<i32>} : memref<4x256xf32, #tpu.memory_space<vmem>>, vector<4x256xf32>,
    %c0_16 = arith.constant 0 : index
    %c0_17 = arith.constant 0 : index
    %31 = vector.load %arg9[%c0_16, %c0_17] : memref<4x256xf32, #tpu.memory_space<vmem>>, vector<4x256xf32>
    %32 = arith.extui %21 : vector<4x256xi1> to vector<4x256xi32>
    %33 = arith.sitofp %32 : vector<4x256xi32> to vector<4x256xf32>
    %34 = arith.addf %31, %33 : vector<4x256xf32>
    %c0_18 = arith.constant 0 : index
    %c0_19 = arith.constant 0 : index
    %35 = vector.load %arg9[%c0_18, %c0_19] : memref<4x256xf32, #tpu.memory_space<vmem>>, vector<4x256xf32>
    tpu.vector_store %arg9[%c0_18, %c0_19], %34 {strides = array<i32>} : memref<4x256xf32, #tpu.memory_space<vmem>>, vector<4x256xf32>,
    %c0_i32_20 = arith.constant 0 : i32
    %36 = arith.cmpi eq, %arg1, %c0_i32_20 : i32
    %37 = arith.extui %36 : i1 to i32
    %c0_i32_21 = arith.constant 0 : i32
    %38 = arith.cmpi ne, %37, %c0_i32_21 : i32
    scf.if %38 {
      %c0_22 = arith.constant 0 : index
      %c0_23 = arith.constant 0 : index
      %39 = vector.load %arg7[%c0_22, %c0_23] : memref<4x256xf32, #tpu.memory_space<vmem>>, vector<4x256xf32>
      %cst_24 = arith.constant dense<0.000000e+00> : vector<4xf32>
      %40 = vector.multi_reduction <add>, %39, %cst_24 [1] : vector<4x256xf32> to vector<4xf32>
      %41 = vector.shape_cast %40 : vector<4xf32> to vector<4x1xf32>
      %c0_25 = arith.constant 0 : index
      %c0_26 = arith.constant 0 : index
      %c0_27 = arith.constant 0 : index
      %42 = vector.load %arg4[%c0_25, %c0_26, %c0_27] : memref<1x4x1xf32, #tpu.memory_space<vmem>>, vector<1x4x1xf32>
      %43 = vector.shape_cast %42 : vector<1x4x1xf32> to vector<4x1xf32>
      %44 = vector.shape_cast %41 : vector<4x1xf32> to vector<1x4x1xf32>
      tpu.vector_store %arg4[%c0_25, %c0_26, %c0_27], %44 {strides = array<i32>} : memref<1x4x1xf32, #tpu.memory_space<vmem>>, vector<1x4x1xf32>,
      %c0_28 = arith.constant 0 : index
      %c0_29 = arith.constant 0 : index
      %45 = vector.load %arg8[%c0_28, %c0_29] : memref<4x256xf32, #tpu.memory_space<vmem>>, vector<4x256xf32>
      %cst_30 = arith.constant dense<0.000000e+00> : vector<4xf32>
      %46 = vector.multi_reduction <add>, %45, %cst_30 [1] : vector<4x256xf32> to vector<4xf32>
      %47 = vector.shape_cast %46 : vector<4xf32> to vector<4x1xf32>
      %c0_31 = arith.constant 0 : index
      %c0_32 = arith.constant 0 : index
      %c0_33 = arith.constant 0 : index
      %48 = vector.load %arg5[%c0_31, %c0_32, %c0_33] : memref<1x4x1xf32, #tpu.memory_space<vmem>>, vector<1x4x1xf32>
      %49 = vector.shape_cast %48 : vector<1x4x1xf32> to vector<4x1xf32>
      %50 = vector.shape_cast %47 : vector<4x1xf32> to vector<1x4x1xf32>
      tpu.vector_store %arg5[%c0_31, %c0_32, %c0_33], %50 {strides = array<i32>} : memref<1x4x1xf32, #tpu.memory_space<vmem>>, vector<1x4x1xf32>,
      %c0_34 = arith.constant 0 : index
      %c0_35 = arith.constant 0 : index
      %51 = vector.load %arg9[%c0_34, %c0_35] : memref<4x256xf32, #tpu.memory_space<vmem>>, vector<4x256xf32>
      %cst_36 = arith.constant dense<0.000000e+00> : vector<4xf32>
      %52 = vector.multi_reduction <add>, %51, %cst_36 [1] : vector<4x256xf32> to vector<4xf32>
      %53 = vector.shape_cast %52 : vector<4xf32> to vector<4x1xf32>
      %c0_37 = arith.constant 0 : index
      %c0_38 = arith.constant 0 : index
      %c0_39 = arith.constant 0 : index
      %54 = vector.load %arg6[%c0_37, %c0_38, %c0_39] : memref<1x4x1xf32, #tpu.memory_space<vmem>>, vector<1x4x1xf32>
      %55 = vector.shape_cast %54 : vector<1x4x1xf32> to vector<4x1xf32>
      %56 = vector.shape_cast %53 : vector<4x1xf32> to vector<1x4x1xf32>
      tpu.vector_store %arg6[%c0_37, %c0_38, %c0_39], %56 {strides = array<i32>} : memref<1x4x1xf32, #tpu.memory_space<vmem>>, vector<1x4x1xf32>,
    } else {
    }
    return
  }
  func.func @transform_0(%arg0: i32, %arg1: i32) -> (i32, i32, i32) {
    %c0_i32 = arith.constant 0 : i32
    %c0_i32_0 = arith.constant 0 : i32
    return %arg0, %c0_i32, %arg1 : i32, i32, i32
  }
  func.func @transform_1(%arg0: i32, %arg1: i32) -> (i32, i32, i32) {
    %c0_i32 = arith.constant 0 : i32
    %c0_i32_0 = arith.constant 0 : i32
    return %arg0, %c0_i32, %arg1 : i32, i32, i32
  }
  func.func @transform_2(%arg0: i32, %arg1: i32) -> (i32, i32, i32) {
    %c0_i32 = arith.constant 0 : i32
    %c0_i32_0 = arith.constant 0 : i32
    %c0_i32_1 = arith.constant 0 : i32
    return %arg0, %c0_i32, %c0_i32_0 : i32, i32, i32
  }
  func.func @transform_3(%arg0: i32, %arg1: i32) -> (i32, i32, i32) {
    %c0_i32 = arith.constant 0 : i32
    %c0_i32_0 = arith.constant 0 : i32
    %c0_i32_1 = arith.constant 0 : i32
    return %arg0, %c0_i32, %c0_i32_0 : i32, i32, i32
  }
  func.func @transform_4(%arg0: i32, %arg1: i32) -> (i32, i32, i32) {
    %c0_i32 = arith.constant 0 : i32
    %c0_i32_0 = arith.constant 0 : i32
    %c0_i32_1 = arith.constant 0 : i32
    return %arg0, %c0_i32, %c0_i32_0 : i32, i32, i32
  }
}

</mosaic_0001>

<bundles_post_ra>
// kernel: tpu_custom_call.1
= control target key start
LH: loop header
LB: loop body
LE: loop exit
PB: predicated region body
PF: predicated region fallthrough
CT: control target
= control target key end

     0   :  { %10 = vsyncpa [#allocation6], 0  ;;  %s934_s0 = inlined_call_operand.hbm [shape: f32[2,4,256], index: 0, kind: input, shape index: {}]   ;;  %s935_s1 = inlined_call_operand.vmem [shape: s8[2,1,256], index: 1, kind: input, shape index: {}]   ;;  %s936_s2 = inlined_call_operand.vmem [shape: f32[2,4,1], index: 2, kind: output, shape index: {0}]   ;;  %s937_s3 = inlined_call_operand.vmem [shape: f32[2,4,1], index: 3, kind: output, shape index: {1}]   ;;  %s938_s4 = inlined_call_operand.vmem [shape: f32[2,4,1], index: 4, kind: output, shape index: {2}]  }
   0x1   :  { %12 = vsyncpa [#allocation6 + $0x1], 0  ;;  %s770_s15 = smov 0   ;;  %s772_s16 = smov 0  }
   0x2   :  { %s774_s17 = smov 0   ;;  %s776_s18 = smov 0  }
   0x3   :  { %s778_s19 = smov 0   ;;  %s780_s20 = smov 0  }
   0x4 LB: > { %s578_s21 = sadd.s32 4294967295, %s741_s20   ;;  %s30_s22 = sadd.s32 1, %s737_s19  ;;  %s741_s20 = sphi %s780_s20, %s18_s20   ;;  %s737_s19 = sphi %s778_s19, %s952_s19   ;;  %s733_s18 = sphi %s776_s18, %s951_s18   ;;  %s729_s17 = sphi %s774_s17, %s950_s17   ;;  %s725_s16 = sphi %s772_s16, %s949_s16   ;;  %s721_s15 = sphi %s770_s15, %s948_s15  }
   0x5   : > { %p32_p0 = scmp.ge.s32.totalorder %s30_s22, 2  ;;  %s39_s23 = sadd.s32 1, %s729_s17 }
   0x6   : > { %p46_p1 = scmp.ne.s32.totalorder %s729_s17, %s725_s16  ;;  %p47_p2 = scmp.eq.s32.totalorder %s741_s20, 0 }
   0x7   : > { %s954_s22 = smov (%p32_p0, %s30_s22), 0  ;;  %p52_p4 = scmp.ne.s32.totalorder %s725_s16, %s721_s15 }
   0x8   : > { %p806_p3 = por %p47_p2, %p46_p1  ;;  %s34_s25 = ssub.s32 %s737_s19, %s954_s22 }
   0x9   : > { %p53_p5 = scmp.eq.s32.totalorder %s578_s21, 0  ;;  %p37_p6 = scmp.eq.s32.totalorder %s34_s25, 0 }
   0xa   : > { %p604_p8 = scmp.lt.s32.totalorder %s741_s20, 2  ;;  %s182_s28 = sand.u32 1, %s729_s17  }
   0xb   : > { %p813_p7 = por %p53_p5, %p52_p4  ;;  %s595_s29 = sshll.u32 %s737_s19, 7 }
   0xc   : > { %s819_s27 = scalar_select %p37_p6, %s729_s17, %s39_s23  }
   0xd   : > { %s582_s30 = sshll.u32 %s182_s28, 3  ;;  %s826_s7 = scalar_lea.hbm %s934_s0, %s595_s29 }
   0xe   : > { %s186_s8 = scalar_lea.vmem [#allocation5], %s582_s30  ;;  %p830_p9 = pnand %p604_p8, %p806_p3 }
   0xf   : > { %s196_s9 = sshll.u32 %s186_s8, 4  ;;  %s183_s11 = scalar_lea.sflag [#allocation6], %s182_s28  ;;  %s834_s9 = int_to_ptr.vmem [resolvable:$true] %s196_s9 }
  0x10   : > { %s661_s12 = scalar_lea.hbm %s826_s7, 128  ;;  %p663_p13 = pneg %p830_p9 }
  0x11   : > { %p662_p12 = scmp.ne.s32.totalorder %s826_s7, %s661_s12  ;;  %s666_s15 = scalar_lea.hbm %s934_s0, 256 }
  0x12   : > { %p667_p2 = scmp.lt.u32.totalorder %s826_s7, %s934_s0  ;;  %p668_p3 = scmp.lt.u32.totalorder %s666_s15, %s661_s12 }
  0x13   : > { %p664_p0 = pnand %p663_p13, %p662_p12  ;;  %p670_p5 = scmp.lt.u32.totalorder %s661_s12, %s826_s7 }
  0x14   : > { %p669_p4 = por %p668_p3, %p667_p2 }
  0x15   : > { %p665_p1 = pneg %p664_p0 }
  0x16   : > { %p671_p6 = por %p670_p5, %p669_p4 }
  0x18   : > { %p672_p8 = pnand %p671_p6, %p665_p1 }
  0x1a   : > { %675 = shalt.err (!%p672_p8)
}
  0x1b   : > { %s676_s24 = scalar_lea.vmem %s834_s9, 128  ;;  %s743_s25 = smov [#allocation5]  }
  0x1c   : > { %p677_p12 = scmp.ne.s32.totalorder %s834_s9, %s676_s24  ;;  %s681_s28 = sshll.u32 %s743_s25, 4  ;;  %s682_s28 = int_to_ptr.vmem [resolvable:$false] %s681_s28 }
  0x1d   : > { %s683_s29 = scalar_lea.vmem %s682_s28, 256  ;;  %p684_p11 = scmp.lt.s32.totalorder %s834_s9, %s682_s28 }
  0x1e   : > { %p679_p0 = pnand %p677_p12, %p663_p13  ;;  %p685_p2 = scmp.lt.s32.totalorder %s683_s29, %s676_s24 }
  0x20   : > { %p680_p10 = pneg %p679_p0  ;;  %p686_p3 = por %p685_p2, %p684_p11 }
  0x22   : > { %p687_p4 = pnand %p686_p3, %p680_p10 }
  0x24   : > { %690 = shalt.err (!%p687_p4)
}
  0x25   : > { %603 = dma.hbm_to_vmem [thread:$0]  (!%p830_p9), %s826_s7, 128, %s834_s9, %s183_s11  }
  0x26   : > { %p942_p1 = scmp.lt.s32.totalorder %s741_s20, 3  ;;  %p943_p5 = scmp.ge.s32.totalorder %s741_s20, 1 }
  0x28   : > { %p214_p13 = pnand %p943_p5, %p942_p1 }
  0x29   : > { %s219_s30 = sand.u32 (!%p214_p13), 1, %s725_s16  }
  0x2a   : > { %217 = sbr.rel (%p214_p13) target bundleno = 268 (0x10c), region = 28  ;;  %s586_s5 = sshll.u32 (!%p214_p13), %s219_s30, 3 }
  0x2b   : > { %s220_s6 = scalar_lea.sflag (!%p214_p13), [#allocation6], %s219_s30  ;;  %s223_s8 = scalar_lea.vmem (!%p214_p13), [#allocation5], %s586_s5 }
  0x31   : > { %716 = dma.done.wait (%p813_p7), %s220_s6, 128  }
  0x32   : > { %718 = vsyncadd (%p813_p7), %s220_s6, 4294967168  ;;  %p265_p10 = scmp.lt.s32.totalorder %s733_s18, 1  ;;  %v344_v0 = vlaneseq  ;;  %vm296_vm0 = vcmask 1043456   ;;  %v292_v4 = vld [vmem:[%s223_s8] sm:$0xff]  ;;  %v744_v23 = vmov 0.0   ;;  %vm403_vm3 = vcmask 3072  }
  0x33   : > { %v294_v6 = vcombine.high %v292_v4, %v292_v4  ;;  %v297_v7 = vsel %vm296_vm0, %v292_v4, -inf }
  0x34   : > { %s956_s18 = smov (!%p265_p10, %s733_s18), 1  ;;  %v345_v1 = vshrl.u32 %v344_v0, 7  ;;  %v298_v9 = vrot.slane %v297_v7, 4 }
  0x35   : > { %s587_s7 = sshll.u32 %s956_s18, 1  ;;  %v304_v10 = vsel %vm296_vm0, %v294_v6, -inf  ;;  %s588_s26 = sshll.u32 %s956_s18, 2 }
  0x36   : > { %s271_s11 = scalar_lea.vmem %s935_s1, %s587_s7  ;;  %v348_v2 = vsub.s32 0, %v345_v1  ;;  %v352_v3 = vsub.s32 4, %v345_v1  ;;  %v299_v13 = vmax.f32 %v297_v7, %v298_v9  ;;  %v305_v14 = vrot.slane %v304_v10, 4  ;;  %s284_s14 = scalar_lea.vmem %s938_s4, %s588_s26 }
  0x37   : > { %v342_v5 = vld [vmem:[%s271_s11] sm:$0x3]  ;;  %s276_s23 = scalar_lea.vmem %s936_s2, %s588_s26  ;;  %s280_s28 = scalar_lea.vmem %s937_s3, %s588_s26 }
  0x38   : > { %v343_v8 = vunpack.c.0.s8 %v342_v5  ;;  %v300_v17 = vrot.slane %v299_v13, 2  ;;  %v306_v18 = vmax.f32 %v304_v10, %v305_v14 }
  0x3a   : > { %v349_v11 = vrot.slane %v343_v8, %v348_v2  ;;  %v353_v12 = vrot.slane %v343_v8, %v352_v3  ;;  %v301_v21 = vmax.f32 %v299_v13, %v300_v17  ;;  %v307_v22 = vrot.slane %v306_v18, 2 }
  0x3c   : > { %v357_v15 = vrot.slane %v349_v11, %v348_v2  ;;  %v361_v16 = vrot.slane %v353_v12, %v348_v2  ;;  %v302_v28 = vrot.slane %v301_v21, 1  ;;  %v308_v29 = vmax.f32 %v306_v18, %v307_v22 }
  0x3e   : > { %vm882_vm1 = vcmp.eq.s32.totalorder %v357_v15, %v345_v1  ;;  %vm886_vm2 = vcmp.eq.s32.totalorder %v361_v16, %v345_v1  ;;  %v303_v32 = vmax.f32 %v301_v21, %v302_v28  ;;  %v309_v33 = vrot.slane %v308_v29, 1 }
  0x3f   : > { %v591_v24 = vsel %vm882_vm1, 1.0, %v744_v23  ;;  %v592_v25 = vsel %vm886_vm2, 1.0, %v744_v23 }
  0x40   : > { %v387_v26 = vcombine.low %v591_v24, %v592_v25  ;;  %v597_v27 = vcombine.low %v592_v25, %v592_v25  ;;  %v310_v35 = vmax.f32 %v308_v29, %v309_v33 }
  0x42   : > { %v419_v30 = vsel %vm296_vm0, %v387_v26, 0.0  ;;  %v420_v31 = vsel %vm296_vm0, %v597_v27, 0.0  ;;  %v313_v36 = vcombine.low %v303_v32, %v310_v35 }
  0x43   : > { %v421_v34 = vadd.f32 %v420_v31, %v419_v30 }
  0x44   : > { %v315_v37 = vsub.f32 %v292_v4, %v313_v36 }
  0x45   : > { %422 = vadd.xlane.f32.xlu1 %v421_v34 }
  0x46   : > { %v316_v38 = vmul.f32 1.442695, %v315_v37 }
  0x48   : > { %655 = vpow2.f32 %v316_v38 }
  0x52   : > { %v656_v39 = vpop.eup %655 }
  0x53   : > { %v319_v40 = vcombine.high %v656_v39, %v656_v39  ;;  %v321_v41 = vsel %vm296_vm0, %v656_v39, 0.0 }
  0x54   : > { %v322_v42 = vrot.slane %v321_v41, 4 }
  0x55   : > { %v328_v43 = vsel %vm296_vm0, %v319_v40, 0.0 }
  0x56   : > { %v323_v44 = vadd.f32 %v322_v42, %v321_v41  ;;  %v329_v45 = vrot.slane %v328_v43, 4 }
  0x58   : > { %v324_v46 = vrot.slane %v323_v44, 2  ;;  %v330_v47 = vadd.f32 %v329_v45, %v328_v43 }
  0x5a   : > { %v325_v48 = vadd.f32 %v324_v46, %v323_v44  ;;  %v331_v49 = vrot.slane %v330_v47, 2 }
  0x5c   : > { %v326_v50 = vrot.slane %v325_v48, 1  ;;  %v332_v51 = vadd.f32 %v331_v49, %v330_v47 }
  0x5e   : > { %v327_v52 = vadd.f32 %v326_v50, %v325_v48  ;;  %v333_v53 = vrot.slane %v332_v51, 1 }
  0x60   : > { %v334_v54 = vadd.f32 %v333_v53, %v332_v51  ;;  %657 = vrcp.f32 %v327_v52 }
  0x62   : > { %659 = vrcp.f32 %v334_v54 }
  0x6a   : > { %v658_v55 = vpop.eup %657 }
  0x6c   : > { %v660_v56 = vpop.eup %659 }
  0x6d   : > { %v339_v57 = vcombine.low %v658_v55, %v660_v56 }
  0x6f   : > { %v341_v58 = vmul.f32 %v656_v39, %v339_v57 }
  0x71   : > { %v366_v59 = vcombine.high %v341_v58, %v341_v58  ;;  %v368_v60 = vsel %vm882_vm1, %v341_v58, 0.0  ;;  %v377_v61 = vmul.f32 %v341_v58, %v341_v58 }
  0x73   : > { %v369_v62 = vsel %vm886_vm2, %v366_v59, 0.0  ;;  %v407_v63 = vcombine.high %v377_v61, %v377_v61  ;;  %v409_v4 = vsel %vm296_vm0, %v377_v61, 0.0 }
  0x74   : > { %v372_v0 = vcombine.low %v368_v60, %v369_v62  ;;  %v596_v1 = vcombine.low %v369_v62, %v369_v62 }
  0x75   : > { %v410_v5 = vsel %vm296_vm0, %v407_v63, 0.0 }
  0x76   : > { %v398_v2 = vsel %vm296_vm0, %v372_v0, 0.0  ;;  %v399_v3 = vsel %vm296_vm0, %v596_v1, 0.0  ;;  %v411_v7 = vadd.f32 %v410_v5, %v409_v4 }
  0x77   : > { %v400_v6 = vadd.f32 %v399_v3, %v398_v2 }
  0x79   : > { %401 = vadd.xlane.f32.xlu0 %v400_v6 }
  0x7d   : > { %412 = vadd.xlane.f32.xlu0 %v411_v7 }
  0xd2   : > { %v423_v8 = vpop.xlane.xlu1 %422 }
  0xd3   : > { %424 = vst.msk [vmem:[%s284_s14] sm:$0xf] %vm403_vm3, %v423_v8 }
 0x106   : > { %v402_v9 = vpop.xlane.xlu0 %401 }
 0x107   : > { %404 = vst.msk [vmem:[%s276_s23] sm:$0xf] %vm403_vm3, %v402_v9 }
 0x10a   : > { %v413_v10 = vpop.xlane.xlu0 %412 }
 0x10b   : > { %414 = vst.msk [vmem:[%s280_s28] sm:$0xf] %vm403_vm3, %v413_v10 }
 0x10c PF: > { %s18_s20 = sadd.s32 1, %s741_s20   ;;  %s948_s15 = smov %s725_s16 }
 0x10d   : > { %p15_p7 = scmp.ge.s32.totalorder %s18_s20, 4   ;;  %s949_s16 = smov %s729_s17 }
 0x10e   : > { %s950_s17 = smov %s819_s27  ;;  %s951_s18 = smov %s737_s19 }
 0x10f   : > { %s952_s19 = smov %s954_s22  ;;  %17 = sbr.rel (!%p15_p7) target bundleno = 4 (0x4), region = 103 }
 0x116   :  { %472 = vsyncpa [#allocation6], 1 }
 0x117   :  { %474 = vsyncpa [#allocation6 + $0x1], 1 }

</bundles_post_ra>
